<compile_context>
chip_gen: v6e
topology: v6e:2x2x1
jax: 0.10.0
libtpu: 0.0.40
codegen_flags: <defaults>
</compile_context>

<pallas_src>
import functools

import jax
import jax.numpy as jnp
from jax import lax
from jax.experimental import pallas as pl
from jax.experimental.pallas import tpu as pltpu


def _contrastive_kernel(x_ref, y_ref, o_ref, *, tau):
    bs = x_ref.shape[0]
    x = x_ref[...].astype(jnp.float32)  # (bs, h)
    y = y_ref[...].astype(jnp.float32)  # (bs, h)

    # Cosine normalization via EUP rsqrt; fold 1/tau into the X side so the
    # similarity matrix comes out already divided by tau.
    inv_nx = lax.rsqrt(jnp.maximum(jnp.sum(x * x, axis=-1, keepdims=True), 1e-16))
    inv_ny = lax.rsqrt(jnp.maximum(jnp.sum(y * y, axis=-1, keepdims=True), 1e-16))
    xn = x * (inv_nx * jnp.float32(1.0 / tau))
    yn = y * inv_ny

    # sim[i, j] = cos(X_i, Y_j) / tau  -- single MXU matmul, contract last dims
    # (no transpose needed on either operand).
    sim = lax.dot_general(
        xn, yn, (((1,), (1,)), ((), ())), preferred_element_type=jnp.float32
    )
    e = jnp.exp(sim)  # exp(sim / tau), shape (bs, bs)

    # Identity mask generated in-kernel (no mask DMA).
    ii = lax.broadcasted_iota(jnp.int32, (bs, bs), 0)
    jj = lax.broadcasted_iota(jnp.int32, (bs, bs), 1)
    eye = ii == jj

    # d[j] = sim[j, j] (already /tau);  pos[j] = exp(d[j])
    d = jnp.sum(jnp.where(eye, sim, 0.0), axis=0, keepdims=True)  # (1, bs)
    pos = jnp.exp(d)                                              # (1, bs)

    # compute_cl(X, Y):  neg_col[j] = sum_i e[i, j] - pos[j]
    neg_col = jnp.sum(e, axis=0, keepdims=True) - pos             # (1, bs)
    # compute_cl(Y, X):  sim_YX = sim^T, so its column sums are row sums of e.
    neg_row = jnp.sum(e, axis=1).reshape(1, bs) - pos             # (1, bs)

    # [log(neg_col) - d] + [log(neg_row) - d]  ==  log(neg_col*neg_row) - 2d
    loss = jnp.log(neg_col * neg_row) - 2.0 * d                   # (1, bs)
    o_ref[...] = loss.astype(o_ref.dtype)


def contrastive_loss(X, Y, tau=1.0):
    """X, Y: (bs, hidden) float arrays. Returns (bs, 1) loss, matching
    Contrastive_Loss(tau, project=False).forward(X, Y)."""
    bs, h = X.shape
    assert Y.shape == (bs, h), "X and Y must have identical (bs, hidden) shapes"

    kernel = functools.partial(_contrastive_kernel, tau=float(tau))

    out = pl.pallas_call(
        kernel,
        out_shape=jax.ShapeDtypeStruct((1, bs), jnp.float32),
        grid=(1,),
        in_specs=[
            pl.BlockSpec((bs, h), lambda i: (0, 0)),
            pl.BlockSpec((bs, h), lambda i: (0, 0)),
        ],
        out_specs=pl.BlockSpec((1, bs), lambda i: (0, 0)),
        compiler_params=pltpu.CompilerParams(dimension_semantics=("arbitrary",)),
    )(X, Y)

    return out.reshape(bs, 1)


def _reference(X, Y, tau=1.0):
    """Pure-JAX mirror of the PyTorch module (project=False)."""

    def compute_cl(A, B):
        dots = jnp.dot(A, B.T, precision=lax.Precision.HIGHEST)
        na = jnp.sqrt(jnp.sum(A * A, axis=-1, keepdims=True))
        nb = jnp.sqrt(jnp.sum(B * B, axis=-1, keepdims=True))
        sim = dots / jnp.maximum(na * nb.T, 1e-8)
        pos = jnp.exp(jnp.diag(sim) / tau)[None, :]
        neg = jnp.sum(jnp.exp(sim / tau), axis=0)[None, :] - pos
        loss = -jnp.log(pos / neg)
        return loss.reshape(A.shape[0], -1)

    return compute_cl(X, Y) + compute_cl(Y, X)


if __name__ == "__main__":
    bs, hidden = 8, 32
    tau = 1.0

    key = jax.random.PRNGKey(0)
    kx, ky = jax.random.split(key)
    X = jax.random.normal(kx, (bs, hidden), dtype=jnp.float32)
    Y = jax.random.normal(ky, (bs, hidden), dtype=jnp.float32)

    out = jax.jit(functools.partial(contrastive_loss, tau=tau))(X, Y)
    out = jax.block_until_ready(out)

    ref = _reference(X, Y, tau)
    assert out.shape == (bs, 1)
    assert jnp.allclose(out, ref, atol=1e-3, rtol=1e-3), "mismatch vs reference"

    print("KERNEL_OK")
</pallas_src>

<mosaic_0001>
module attributes {stable_mosaic.version = 11 : i64} {
  func.func @_contrastive_kernel(%arg0: i32, %arg1: memref<8x32xf32, #tpu.memory_space<vmem>>, %arg2: memref<8x32xf32, #tpu.memory_space<vmem>>, %arg3: memref<1x8xf32, #tpu.memory_space<vmem>>) attributes {dimension_semantics = [#tpu.dimension_semantics<arbitrary>], iteration_bounds = array<i64: 1>, scalar_prefetch = 0 : i64, scratch_operands = 0 : i64, tpu.core_type = #tpu.core_type<tc>, window_params = [{pipeline_mode = #tpu.pipeline_mode<synchronous>, transform_indices = @transform_0, window_bounds = array<i64: 8, 32>}, {pipeline_mode = #tpu.pipeline_mode<synchronous>, transform_indices = @transform_1, window_bounds = array<i64: 8, 32>}, {pipeline_mode = #tpu.pipeline_mode<synchronous>, transform_indices = @transform_2, window_bounds = array<i64: 1, 8>}]} {
    %c0 = arith.constant 0 : index
    %c0_0 = arith.constant 0 : index
    %0 = vector.load %arg1[%c0, %c0_0] : memref<8x32xf32, #tpu.memory_space<vmem>>, vector<8x32xf32>
    %c0_1 = arith.constant 0 : index
    %c0_2 = arith.constant 0 : index
    %1 = vector.load %arg2[%c0_1, %c0_2] : memref<8x32xf32, #tpu.memory_space<vmem>>, vector<8x32xf32>
    %2 = arith.mulf %0, %0 : vector<8x32xf32>
    %cst = arith.constant dense<0.000000e+00> : vector<8xf32>
    %3 = vector.multi_reduction <add>, %2, %cst [1] : vector<8x32xf32> to vector<8xf32>
    %4 = vector.shape_cast %3 : vector<8xf32> to vector<8x1xf32>
    %cst_3 = arith.constant 1.000000e-16 : f32
    %5 = vector.broadcast %cst_3 : f32 to vector<8x1xf32>
    %6 = arith.maximumf %4, %5 : vector<8x1xf32>
    %7 = math.rsqrt %6 : vector<8x1xf32>
    %8 = arith.mulf %1, %1 : vector<8x32xf32>
    %cst_4 = arith.constant dense<0.000000e+00> : vector<8xf32>
    %9 = vector.multi_reduction <add>, %8, %cst_4 [1] : vector<8x32xf32> to vector<8xf32>
    %10 = vector.shape_cast %9 : vector<8xf32> to vector<8x1xf32>
    %cst_5 = arith.constant 1.000000e-16 : f32
    %11 = vector.broadcast %cst_5 : f32 to vector<8x1xf32>
    %12 = arith.maximumf %10, %11 : vector<8x1xf32>
    %13 = math.rsqrt %12 : vector<8x1xf32>
    %cst_6 = arith.constant 1.000000e+00 : f32
    %14 = vector.broadcast %cst_6 : f32 to vector<8x1xf32>
    %15 = arith.mulf %7, %14 : vector<8x1xf32>
    %16 = vector.broadcast %15 : vector<8x1xf32> to vector<8x32xf32>
    %17 = arith.mulf %0, %16 : vector<8x32xf32>
    %18 = vector.broadcast %13 : vector<8x1xf32> to vector<8x32xf32>
    %19 = arith.mulf %1, %18 : vector<8x32xf32>
    %cst_7 = arith.constant dense<0.000000e+00> : vector<8x8xf32>
    %20 = tpu.matmul %17, %19, %cst_7 {dimension_numbers = #tpu.dot_dimension_numbers<[1], [1], [0], [0], [0, 0, 1, 0], [], []>} : vector<8x32xf32>, vector<8x32xf32>, vector<8x8xf32> -> vector<8x8xf32>
    %21 = math.exp %20 : vector<8x8xf32>
    %22 = tpu.iota {dimensions = array<i32: 0>} : vector<8x8xi32>
    %23 = tpu.iota {dimensions = array<i32: 1>} : vector<8x8xi32>
    %24 = arith.cmpi eq, %22, %23 : vector<8x8xi32>
    %cst_8 = arith.constant 0.000000e+00 : f32
    %25 = vector.broadcast %cst_8 : f32 to vector<8x8xf32>
    %26 = arith.select %24, %20, %25 : vector<8x8xi1>, vector<8x8xf32>
    %cst_9 = arith.constant dense<0.000000e+00> : vector<8xf32>
    %27 = vector.multi_reduction <add>, %26, %cst_9 [0] : vector<8x8xf32> to vector<8xf32>
    %28 = vector.shape_cast %27 : vector<8xf32> to vector<1x8xf32>
    %29 = math.exp %28 : vector<1x8xf32>
    %cst_10 = arith.constant dense<0.000000e+00> : vector<8xf32>
    %30 = vector.multi_reduction <add>, %21, %cst_10 [0] : vector<8x8xf32> to vector<8xf32>
    %31 = vector.shape_cast %30 : vector<8xf32> to vector<1x8xf32>
    %32 = arith.subf %31, %29 : vector<1x8xf32>
    %cst_11 = arith.constant dense<0.000000e+00> : vector<8xf32>
    %33 = vector.multi_reduction <add>, %21, %cst_11 [1] : vector<8x8xf32> to vector<8xf32>
    %34 = vector.shape_cast %33 : vector<8xf32> to vector<1x8xf32>
    %35 = arith.subf %34, %29 : vector<1x8xf32>
    %36 = arith.mulf %32, %35 : vector<1x8xf32>
    %37 = math.log %36 : vector<1x8xf32>
    %cst_12 = arith.constant 2.000000e+00 : f32
    %38 = vector.broadcast %cst_12 : f32 to vector<1x8xf32>
    %39 = arith.mulf %38, %28 : vector<1x8xf32>
    %40 = arith.subf %37, %39 : vector<1x8xf32>
    %c0_13 = arith.constant 0 : index
    %c0_14 = arith.constant 0 : index
    %41 = vector.load %arg3[%c0_13, %c0_14] : memref<1x8xf32, #tpu.memory_space<vmem>>, vector<1x8xf32>
    tpu.vector_store %arg3[%c0_13, %c0_14], %40 {strides = array<i32>} : memref<1x8xf32, #tpu.memory_space<vmem>>, vector<1x8xf32>,
    return
  }
  func.func @transform_0(%arg0: i32) -> (i32, i32) {
    %c0_i32 = arith.constant 0 : i32
    %c0_i32_0 = arith.constant 0 : i32
    %c0_i32_1 = arith.constant 0 : i32
    return %c0_i32, %c0_i32_0 : i32, i32
  }
  func.func @transform_1(%arg0: i32) -> (i32, i32) {
    %c0_i32 = arith.constant 0 : i32
    %c0_i32_0 = arith.constant 0 : i32
    %c0_i32_1 = arith.constant 0 : i32
    return %c0_i32, %c0_i32_0 : i32, i32
  }
  func.func @transform_2(%arg0: i32) -> (i32, i32) {
    %c0_i32 = arith.constant 0 : i32
    %c0_i32_0 = arith.constant 0 : i32
    %c0_i32_1 = arith.constant 0 : i32
    return %c0_i32, %c0_i32_0 : i32, i32
  }
}

</mosaic_0001>

<bundles_post_ra>
// kernel: contrastive_loss.1
= control target key start
LH: loop header
LB: loop body
LE: loop exit
PB: predicated region body
PF: predicated region fallthrough
CT: control target
= control target key end

     0   :  { %7 = vsyncpa [#allocation3], 0  ;;  %s323_s0 = inlined_call_operand.hbm [shape: f32[8,32], index: 0, kind: input, shape index: {}]   ;;  %s324_s1 = inlined_call_operand.hbm [shape: f32[8,32], index: 1, kind: input, shape index: {}]   ;;  %s325_s2 = inlined_call_operand.hbm [shape: f32[1,8], index: 2, kind: output, shape index: {}]  }
   0x1   :  { %8 = vsyncpa [#allocation6], 0 }
   0x2   :  { %9 = vsyncpa [#allocation4], 0  ;;  %s287_s9 = smov [#allocation2]   ;;  %s288_s11 = smov [#allocation5]  }
   0x3   :  { %s16_s10 = sshll.u32 %s287_s9, 4  ;;  %s26_s12 = sshll.u32 %s288_s11, 4  ;;  %s17_s10 = int_to_ptr.vmem [resolvable:$true] %s16_s10  ;;  %s27_s12 = int_to_ptr.vmem [resolvable:$true] %s26_s12 }
   0x4   :  { %s229_s13 = scalar_lea.vmem %s17_s10, 128  ;;  %p234_p1 = scmp.lt.s32.totalorder %s17_s10, %s17_s10 }
   0x5   :  { %p230_p0 = scmp.ne.s32.totalorder %s17_s10, %s229_s13  ;;  %p235_p2 = scmp.lt.s32.totalorder %s229_s13, %s229_s13 }
   0x7   :  { %p236_p3 = por %p235_p2, %p234_p1 }
   0x9   :  { %p237_p4 = pnand %p236_p3, %p230_p0 }
   0xb   :  { %240 = shalt.err (!%p237_p4)
}
   0xc   :  { %19 = dma.hbm_to_vmem [thread:$0]  %s323_s0, 128, %s17_s10, [#allocation3]  }
   0xd   :  { %s249_s16 = scalar_lea.vmem %s27_s12, 128  ;;  %p254_p6 = scmp.lt.s32.totalorder %s27_s12, %s27_s12 }
   0xe   :  { %p250_p5 = scmp.ne.s32.totalorder %s27_s12, %s249_s16  ;;  %p255_p7 = scmp.lt.s32.totalorder %s249_s16, %s249_s16 }
  0x10   :  { %p256_p8 = por %p255_p7, %p254_p6 }
  0x12   :  { %p257_p9 = pnand %p256_p8, %p250_p5 }
  0x14   :  { %260 = shalt.err (!%p257_p9)
}
  0x15   :  { %29 = dma.hbm_to_vmem [thread:$0]  %s324_s1, 128, %s27_s12, [#allocation6]  }
  0x16   :  { %281 = dma.done.wait [#allocation3], 128  }
  0x17   :  { %282 = vsyncadd [#allocation3], 4294967168 }
  0x18   :  { %283 = dma.done.wait [#allocation6], 128  }
  0x19   :  { %284 = vsyncadd [#allocation6], 4294967168  ;;  %v37_v0 = vld [vmem:[#allocation5] sm:$0xff]  ;;  %vm39_vm0 = vcmask 261120   ;;  %v36_v1 = vld [vmem:[#allocation2] sm:$0xff]  ;;  %v289_v6 = vmov 0.0   ;;  %v131_v15 = vlaneseq }
  0x1a   :  { %v45_v2 = vmul.f32 %v37_v0, %v37_v0  ;;  %v38_v3 = vmul.f32 %v36_v1, %v36_v1  ;;  %199 = vmatprep.subr.mxu0 %v289_v6  ;;  %vm290_vm1 = vmmov 0   ;;  %vm137_vm3 = vcmask 64512   ;;  %s292_s0 = smov [#allocation7]  }
  0x1b   :  { %201 = vmatprep.mubr.msk.f32.mxu0 %vm290_vm1, %v289_v6  ;;  %v132_v16 = vshrl.u32 %v131_v15, 7  ;;  %v134_v17 = vand.u32 127, %v131_v15  ;;  %v291_v40 = vmov 0   ;;  %s185_s1 = sshll.u32 %s292_s0, 4  ;;  %vm177_vm4 = vcmask 57344   ;;  %s186_s1 = int_to_ptr.vmem [resolvable:$true] %s185_s1 }
  0x1c   :  { %v46_v4 = vsel %vm39_vm0, %v45_v2, 0.0  ;;  %v40_v5 = vsel %vm39_vm0, %v38_v3, 0.0  ;;  %210 = vset.pattern.permute.xlu0 %v291_v40  ;;  %s261_s19 = scalar_lea.vmem %s186_s1, 16  ;;  %s265_s20 = scalar_lea.vmem %s186_s1, 32 }
  0x1d   :  { %47 = vadd.xlane.f32.xlu0 %v46_v4  ;;  %vm135_vm2 = vcmp.eq.s32.totalorder %v132_v16, %v134_v17  ;;  %v169_v44 = vsub.s32 %v134_v17, %v132_v16  ;;  %p262_p10 = scmp.ne.s32.totalorder %s186_s1, %s261_s19  ;;  %p266_p11 = scmp.lt.s32.totalorder %s186_s1, %s186_s1 }
  0x1e   :  { %p267_p12 = scmp.lt.s32.totalorder %s265_s20, %s261_s19 }
  0x20   :  { %p268_p13 = por %p267_p12, %p266_p11 }
  0x21   :  { %41 = vadd.xlane.f32.xlu0 %v40_v5 }
  0x22   :  { %p269_p0 = pnand %p268_p13, %p262_p10 }
  0xa6   :  { %v48_v7 = vpop.xlane.xlu0 %47 }
  0xa7   :  { %v49_v8 = vmax.f32 %v48_v7, 1e-16 }
  0xa9   :  { %211 = vrsqrt.f32 %v49_v8 }
  0xaa   :  { %v42_v9 = vpop.xlane.xlu0 %41 }
  0xab   :  { %v43_v10 = vmax.f32 %v42_v9, 1e-16 }
  0xad   :  { %213 = vrsqrt.f32 %v43_v10 }
  0xb6   :  { %v212_v11 = vpop.eup %211 }
  0xb7   :  { %v52_v12 = vmul.f32 %v212_v11, %v37_v0 }
  0xb9   :  { %200 = vmatpush3.xpose.msk.msra.mxu0 %vm39_vm0, %v52_v12 }
  0xba   :  { %v214_v13 = vpop.eup %213 }
  0xbb   :  { %v51_v14 = vmul.f32 %v214_v13, %v36_v1 }
  0xbd   :  { %202 = vmatmul.mubr.msk.f32.vlgmr.msra.gmra.mxu0 %vm39_vm0, %v51_v14 }
 0x17d   :  { %v125_v18 = vpop.f32.mrf.mxu0 }
 0x17e   :  { %v129_v19 = vmul.f32 1.442695, %v125_v18  ;;  %v136_v20 = vsel %vm135_vm2, %v125_v18, 0.0 }
 0x17f   :  { %v138_v21 = vsel %vm137_vm3, %v136_v20, 0.0  ;;  %v203_v22 = vpop.f32.mrf.mxu0 }
 0x180   :  { %215 = vpow2.f32 %v129_v19  ;;  %v139_v23 = vrot.slane %v138_v21, 4 }
 0x182   :  { %v140_v24 = vadd.f32 %v139_v23, %v138_v21 }
 0x184   :  { %v141_v25 = vrot.slane %v140_v24, 2 }
 0x186   :  { %v142_v26 = vadd.f32 %v141_v25, %v140_v24 }
 0x188   :  { %v143_v27 = vrot.slane %v142_v26, 1 }
 0x18a   :  { %v144_v28 = vadd.f32 %v143_v27, %v142_v26 }
 0x18c   :  { %v145_v29 = vmul.f32 1.442695, %v144_v28  ;;  %v175_v50 = vmul.f32 2.0, %v144_v28 }
 0x18d   :  { %v216_v30 = vpop.eup %215 }
 0x18e   :  { %217 = vpow2.f32 %v145_v29  ;;  %v147_v31 = vsel %vm137_vm3, %v216_v30, 0.0 }
 0x18f   :  { %155 = vadd.xlane.f32.xlu1 %v147_v31  ;;  %v148_v32 = vrot.slane %v147_v31, 4 }
 0x191   :  { %v149_v33 = vadd.f32 %v148_v32, %v147_v31 }
 0x193   :  { %v150_v34 = vrot.slane %v149_v33, 2 }
 0x195   :  { %v151_v35 = vadd.f32 %v150_v34, %v149_v33 }
 0x197   :  { %v152_v36 = vrot.slane %v151_v35, 1 }
 0x199   :  { %v153_v37 = vadd.f32 %v152_v36, %v151_v35 }
 0x19b   :  { %v218_v38 = vpop.eup %217 }
 0x19c   :  { %v154_v39 = vsub.f32 %v153_v37, %v218_v38 }
 0x1a0   :  { %159 = vbcast.lane.b32.xlu1 %v218_v38, 256 }
 0x218   :  { %v156_v41 = vpop.xlane.xlu1 %155 }
 0x21c   :  { %v160_v42 = vpop.permute.xlu1 %159 }
 0x21d   :  { %v162_v43 = vsub.f32 %v156_v41, %v160_v42 }
 0x21f   :  { %165 = vperm.xlu0 %210, %v162_v43  }
 0x29a   :  { %v166_v45 = vpop.permute.xlu0 %165 }
 0x29b   :  { %v170_v46 = vrot.slane %v166_v45, %v169_v44 }
 0x29d   :  { %v172_v47 = vmul.f32 %v170_v46, %v154_v39 }
 0x29f   :  { %219 = vlog2.f32 %v172_v47 }
 0x2ac   :  { %v220_v48 = vpop.eup %219 }
 0x2ad   :  { %v174_v49 = vmul.f32 0.6931472, %v220_v48 }
 0x2af   :  { %v176_v51 = vsub.f32 %v174_v49, %v175_v50 }
 0x2b1   :  { %178 = vst.msk [vmem:[#allocation7] sm:$0x1] %vm177_vm4, %v176_v51 }
 0x2b2   :  { %272 = shalt.err (!%p269_p0)
}
 0x2b3   :  { %188 = dma.vmem_to_hbm [thread:$0]  %s186_s1, 16, %s325_s2, [#allocation4]  }
 0x2b4   :  { %285 = dma.done.wait [#allocation4], 16  }
 0x2b5   :  { %286 = vsyncadd [#allocation4], 4294967280 }
 0x2b6   :  { %192 = vsyncpa [#allocation3], 1 }
 0x2b7   :  { %193 = vsyncpa [#allocation6], 1 }
 0x2b8   :  { %194 = vsyncpa [#allocation4], 1 }

</bundles_post_ra>
